<compile_context>
chip_gen: v6e
topology: v6e:2x2x1
jax: 0.10.0
libtpu: 0.0.40
codegen_flags: <defaults>
</compile_context>

<pallas_src>
import jax
import jax.numpy as jnp
from jax.experimental import pallas as pl
from jax.experimental.pallas import tpu as pltpu


def make_dense_block_kernel(n_layers, H, W):
    HW = H * W

    def kernel(x_ref, masks_ref, *rest):
        # rest = (w_0, b_0, ..., w_{L-1}, b_{L-1}, bn_scale, bn_shift, wf, bf, o_ref)
        layer_refs = [(rest[2 * i], rest[2 * i + 1]) for i in range(n_layers)]
        bn_scale_ref, bn_shift_ref, wf_ref, bf_ref, o_ref = rest[2 * n_layers:]

        masks = masks_ref[...]                       # (9, HW) zero-pad validity masks
        feats = [x_ref[0].astype(jnp.float32)]       # dense feature list, each (C_i, HW)

        for w_ref, b_ref in layer_refs:
            # DenseBlockUnit: ReLU(cat(features)) -> Conv3x3(padding=1) + bias
            inp = feats[0] if len(feats) == 1 else jnp.concatenate(feats, axis=0)
            inp = jnp.maximum(inp, 0.0)              # (C_in, HW)
            cols = []
            for t in range(9):                       # im2col via cheap lane rolls
                dy, dx = t // 3 - 1, t % 3 - 1
                off = dy * W + dx
                shifted = inp if off == 0 else pltpu.roll(inp, (-off) % HW, 1)
                cols.append(shifted * masks[t:t + 1, :])
            stack = jnp.concatenate(cols, axis=0)    # (9*C_in, HW)
            out = jnp.dot(w_ref[...], stack, preferred_element_type=jnp.float32)
            feats.append(out + b_ref[...])           # raw (pre-ReLU) layer output

        full = jnp.concatenate(feats, axis=0)        # (C_total, HW), torch.cat order
        y = jnp.maximum(full * bn_scale_ref[...] + bn_shift_ref[...], 0.0)  # BN + ReLU
        out = jnp.dot(wf_ref[...], y, preferred_element_type=jnp.float32) + bf_ref[...]
        # TODO(synk): nn.Dropout(0.5) is identity at inference; train-time masking not implemented.
        o_ref[0] = out.astype(o_ref.dtype)

    return kernel


@jax.jit
def dense_block_pallas(x, layer_ws, layer_bs, bn_gamma, bn_beta, bn_mean, bn_var,
                       final_w, final_b):
    B, C0, H, W = x.shape
    HW = H * W
    n_layers = len(layer_ws)
    c_total = C0 + sum(int(w.shape[0]) for w in layer_ws)
    out_channels = final_w.shape[0]
    eps = 1e-5

    x_flat = x.reshape(B, C0, HW)                    # lane-dense: last dim = H*W

    # Boundary masks for the 9 taps of a zero-padded 3x3 conv in flat (H*W) layout.
    p = jnp.arange(HW, dtype=jnp.int32)
    yy, xx = p // W, p % W
    mask_rows = []
    for t in range(9):
        dy, dx = t // 3 - 1, t % 3 - 1
        mask_rows.append((yy + dy >= 0) & (yy + dy < H) & (xx + dx >= 0) & (xx + dx < W))
    masks = jnp.stack(mask_rows, axis=0).astype(jnp.float32)          # (9, HW)

    # im2col weight matrices: W2[co, t*C_in + ci] = w[co, ci, kh, kw], t = kh*3 + kw
    w_mats = [w.transpose(0, 2, 3, 1).reshape(w.shape[0], 9 * w.shape[1]).astype(jnp.float32)
              for w in layer_ws]
    b_cols = [b.reshape(-1, 1).astype(jnp.float32) for b in layer_bs]

    inv = bn_gamma / jnp.sqrt(bn_var + eps)                           # fold inference BN
    bn_scale = inv.reshape(-1, 1).astype(jnp.float32)                 # (C_total, 1)
    bn_shift = (bn_beta - bn_mean * inv).reshape(-1, 1).astype(jnp.float32)

    wf = final_w.reshape(out_channels, c_total).astype(jnp.float32)
    bf = final_b.reshape(-1, 1).astype(jnp.float32)

    def full_spec(shape):
        return pl.BlockSpec(shape, lambda b: (0,) * len(shape))

    in_specs = [pl.BlockSpec((1, C0, HW), lambda b: (b, 0, 0)), full_spec(masks.shape)]
    args = [x_flat, masks]
    for w2, b2 in zip(w_mats, b_cols):
        in_specs += [full_spec(w2.shape), full_spec(b2.shape)]
        args += [w2, b2]
    in_specs += [full_spec(bn_scale.shape), full_spec(bn_shift.shape),
                 full_spec(wf.shape), full_spec(bf.shape)]
    args += [bn_scale, bn_shift, wf, bf]

    out = pl.pallas_call(
        make_dense_block_kernel(n_layers, H, W),
        out_shape=jax.ShapeDtypeStruct((B, out_channels, HW), x.dtype),
        grid_spec=pltpu.PrefetchScalarGridSpec(
            num_scalar_prefetch=0,
            grid=(B,),
            in_specs=in_specs,
            out_specs=pl.BlockSpec((1, out_channels, HW), lambda b: (b, 0, 0)),
        ),
        compiler_params=pltpu.CompilerParams(
            dimension_semantics=("parallel",),     # v7x: shard batch across both TCs
            vmem_limit_bytes=32 * 1024 * 1024,
        ),
    )(*args)
    return out.reshape(B, out_channels, H, W)


def dense_block_reference(x, layer_ws, layer_bs, bn_gamma, bn_beta, bn_mean, bn_var,
                          final_w, final_b, eps=1e-5):
    # Pure-JAX reference matching the PyTorch forward (inference mode), NCHW.
    hi = jax.lax.Precision.HIGHEST
    feats = [x]
    for w, b in zip(layer_ws, layer_bs):
        inp = jnp.concatenate(feats, axis=1) if len(feats) > 1 else feats[0]
        inp = jnp.maximum(inp, 0.0)
        y = jax.lax.conv_general_dilated(
            inp, w, window_strides=(1, 1), padding=((1, 1), (1, 1)),
            dimension_numbers=("NCHW", "OIHW", "NCHW"), precision=hi)
        feats.append(y + b[None, :, None, None])
    xf = jnp.concatenate(feats, axis=1)
    xf = (xf - bn_mean[None, :, None, None]) * (
        bn_gamma[None, :, None, None] / jnp.sqrt(bn_var[None, :, None, None] + eps)
    ) + bn_beta[None, :, None, None]
    xf = jnp.maximum(xf, 0.0)
    y = jax.lax.conv_general_dilated(
        xf, final_w, window_strides=(1, 1), padding="VALID",
        dimension_numbers=("NCHW", "OIHW", "NCHW"), precision=hi)
    return y + final_b[None, :, None, None]      # Dropout(0.5) == identity at inference


if __name__ == "__main__":
    # Small shapes consistent with the module: DenseBlock(in=4, out=8, grow_rate=4, num_layers=2)
    B, H, W = 2, 16, 16
    in_channels, out_channels, grow_rate, num_layers = 4, 8, 4, 2

    # Mirror the PyTorch constructor's channel bookkeeping.
    layer_shapes = []
    in_c, total = in_channels, in_channels
    for _ in range(num_layers):
        layer_shapes.append((total, in_c + grow_rate))   # (conv in_ch, conv out_ch)
        in_c += grow_rate
        total += in_c
    # `total` == channel width after the dense concatenation (BN / 1x1 conv width)

    keys = iter(jax.random.split(jax.random.PRNGKey(0), 2 * num_layers + 12))
    x = jax.random.normal(next(keys), (B, in_channels, H, W), dtype=jnp.float32)
    layer_ws, layer_bs = [], []
    for ci, co in layer_shapes:
        layer_ws.append(0.1 * jax.random.normal(next(keys), (co, ci, 3, 3), jnp.float32))
        layer_bs.append(0.1 * jax.random.normal(next(keys), (co,), jnp.float32))
    bn_gamma = 1.0 + 0.1 * jax.random.normal(next(keys), (total,), jnp.float32)
    bn_beta = 0.1 * jax.random.normal(next(keys), (total,), jnp.float32)
    bn_mean = 0.1 * jax.random.normal(next(keys), (total,), jnp.float32)
    bn_var = jax.random.uniform(next(keys), (total,), jnp.float32, minval=0.5, maxval=1.5)
    final_w = 0.1 * jax.random.normal(next(keys), (out_channels, total, 1, 1), jnp.float32)
    final_b = 0.1 * jax.random.normal(next(keys), (out_channels,), jnp.float32)

    out = dense_block_pallas(x, layer_ws, layer_bs, bn_gamma, bn_beta, bn_mean, bn_var,
                             final_w, final_b)
    out = jax.block_until_ready(out)

    ref = dense_block_reference(x, layer_ws, layer_bs, bn_gamma, bn_beta, bn_mean, bn_var,
                                final_w, final_b)
    assert out.shape == (B, out_channels, H, W)
    # Tolerance leaves headroom for matmul-pass precision differences between
    # the Mosaic MXU path and the XLA reference convolutions.
    max_diff = float(jnp.max(jnp.abs(out - ref)))
    assert jnp.allclose(out, ref, atol=5e-3, rtol=5e-3), f"mismatch vs reference, max|d|={max_diff}"

    print("KERNEL_OK")
</pallas_src>

<mosaic_0001>
module attributes {stable_mosaic.version = 11 : i64} {
  func.func @kernel(%arg0: i32, %arg1: memref<1x4x256xf32, #tpu.memory_space<vmem>>, %arg2: memref<9x256xf32, #tpu.memory_space<vmem>>, %arg3: memref<8x36xf32, #tpu.memory_space<vmem>>, %arg4: memref<8x1xf32, #tpu.memory_space<vmem>>, %arg5: memref<12x108xf32, #tpu.memory_space<vmem>>, %arg6: memref<12x1xf32, #tpu.memory_space<vmem>>, %arg7: memref<24x1xf32, #tpu.memory_space<vmem>>, %arg8: memref<24x1xf32, #tpu.memory_space<vmem>>, %arg9: memref<8x24xf32, #tpu.memory_space<vmem>>, %arg10: memref<8x1xf32, #tpu.memory_space<vmem>>, %arg11: memref<1x8x256xf32, #tpu.memory_space<vmem>>) attributes {dimension_semantics = [#tpu.dimension_semantics<parallel>], iteration_bounds = array<i64: 2>, scalar_prefetch = 0 : i64, scratch_operands = 0 : i64, tpu.core_type = #tpu.core_type<tc>, window_params = [{transform_indices = @transform_0, window_bounds = array<i64: 1, 4, 256>}, {pipeline_mode = #tpu.pipeline_mode<synchronous>, transform_indices = @transform_1, window_bounds = array<i64: 9, 256>}, {pipeline_mode = #tpu.pipeline_mode<synchronous>, transform_indices = @transform_2, window_bounds = array<i64: 8, 36>}, {pipeline_mode = #tpu.pipeline_mode<synchronous>, transform_indices = @transform_3, window_bounds = array<i64: 8, 1>}, {pipeline_mode = #tpu.pipeline_mode<synchronous>, transform_indices = @transform_4, window_bounds = array<i64: 12, 108>}, {pipeline_mode = #tpu.pipeline_mode<synchronous>, transform_indices = @transform_5, window_bounds = array<i64: 12, 1>}, {pipeline_mode = #tpu.pipeline_mode<synchronous>, transform_indices = @transform_6, window_bounds = array<i64: 24, 1>}, {pipeline_mode = #tpu.pipeline_mode<synchronous>, transform_indices = @transform_7, window_bounds = array<i64: 24, 1>}, {pipeline_mode = #tpu.pipeline_mode<synchronous>, transform_indices = @transform_8, window_bounds = array<i64: 8, 24>}, {pipeline_mode = #tpu.pipeline_mode<synchronous>, transform_indices = @transform_9, window_bounds = array<i64: 8, 1>}, {transform_indices = @transform_10, window_bounds = array<i64: 1, 8, 256>}]} {
    %c0 = arith.constant 0 : index
    %c0_0 = arith.constant 0 : index
    %0 = vector.load %arg2[%c0, %c0_0] : memref<9x256xf32, #tpu.memory_space<vmem>>, vector<9x256xf32>
    %c0_1 = arith.constant 0 : index
    %c0_2 = arith.constant 0 : index
    %c0_3 = arith.constant 0 : index
    %1 = vector.load %arg1[%c0_1, %c0_2, %c0_3] : memref<1x4x256xf32, #tpu.memory_space<vmem>>, vector<1x4x256xf32>
    %2 = vector.shape_cast %1 : vector<1x4x256xf32> to vector<4x256xf32>
    %cst = arith.constant 0.000000e+00 : f32
    %3 = vector.broadcast %cst : f32 to vector<4x256xf32>
    %4 = arith.maximumf %2, %3 : vector<4x256xf32>
    %c17_i32 = arith.constant 17 : i32
    %5 = tpu.dynamic_rotate %4 by %c17_i32 dim 1 : vector<4x256xf32>, i32 -> vector<4x256xf32>
    %6 = vector.extract_strided_slice %0 {offsets = [0, 0], sizes = [1, 256], strides = [1, 1]} : vector<9x256xf32> to vector<1x256xf32>
    %7 = vector.broadcast %6 : vector<1x256xf32> to vector<4x256xf32>
    %8 = arith.mulf %5, %7 : vector<4x256xf32>
    %c16_i32 = arith.constant 16 : i32
    %9 = tpu.dynamic_rotate %4 by %c16_i32 dim 1 : vector<4x256xf32>, i32 -> vector<4x256xf32>
    %10 = vector.extract_strided_slice %0 {offsets = [1, 0], sizes = [1, 256], strides = [1, 1]} : vector<9x256xf32> to vector<1x256xf32>
    %11 = vector.broadcast %10 : vector<1x256xf32> to vector<4x256xf32>
    %12 = arith.mulf %9, %11 : vector<4x256xf32>
    %c15_i32 = arith.constant 15 : i32
    %13 = tpu.dynamic_rotate %4 by %c15_i32 dim 1 : vector<4x256xf32>, i32 -> vector<4x256xf32>
    %14 = vector.extract_strided_slice %0 {offsets = [2, 0], sizes = [1, 256], strides = [1, 1]} : vector<9x256xf32> to vector<1x256xf32>
    %15 = vector.broadcast %14 : vector<1x256xf32> to vector<4x256xf32>
    %16 = arith.mulf %13, %15 : vector<4x256xf32>
    %c1_i32 = arith.constant 1 : i32
    %17 = tpu.dynamic_rotate %4 by %c1_i32 dim 1 : vector<4x256xf32>, i32 -> vector<4x256xf32>
    %18 = vector.extract_strided_slice %0 {offsets = [3, 0], sizes = [1, 256], strides = [1, 1]} : vector<9x256xf32> to vector<1x256xf32>
    %19 = vector.broadcast %18 : vector<1x256xf32> to vector<4x256xf32>
    %20 = arith.mulf %17, %19 : vector<4x256xf32>
    %21 = vector.extract_strided_slice %0 {offsets = [4, 0], sizes = [1, 256], strides = [1, 1]} : vector<9x256xf32> to vector<1x256xf32>
    %22 = vector.broadcast %21 : vector<1x256xf32> to vector<4x256xf32>
    %23 = arith.mulf %4, %22 : vector<4x256xf32>
    %c255_i32 = arith.constant 255 : i32
    %24 = tpu.dynamic_rotate %4 by %c255_i32 dim 1 : vector<4x256xf32>, i32 -> vector<4x256xf32>
    %25 = vector.extract_strided_slice %0 {offsets = [5, 0], sizes = [1, 256], strides = [1, 1]} : vector<9x256xf32> to vector<1x256xf32>
    %26 = vector.broadcast %25 : vector<1x256xf32> to vector<4x256xf32>
    %27 = arith.mulf %24, %26 : vector<4x256xf32>
    %c241_i32 = arith.constant 241 : i32
    %28 = tpu.dynamic_rotate %4 by %c241_i32 dim 1 : vector<4x256xf32>, i32 -> vector<4x256xf32>
    %29 = vector.extract_strided_slice %0 {offsets = [6, 0], sizes = [1, 256], strides = [1, 1]} : vector<9x256xf32> to vector<1x256xf32>
    %30 = vector.broadcast %29 : vector<1x256xf32> to vector<4x256xf32>
    %31 = arith.mulf %28, %30 : vector<4x256xf32>
    %c240_i32 = arith.constant 240 : i32
    %32 = tpu.dynamic_rotate %4 by %c240_i32 dim 1 : vector<4x256xf32>, i32 -> vector<4x256xf32>
    %33 = vector.extract_strided_slice %0 {offsets = [7, 0], sizes = [1, 256], strides = [1, 1]} : vector<9x256xf32> to vector<1x256xf32>
    %34 = vector.broadcast %33 : vector<1x256xf32> to vector<4x256xf32>
    %35 = arith.mulf %32, %34 : vector<4x256xf32>
    %c239_i32 = arith.constant 239 : i32
    %36 = tpu.dynamic_rotate %4 by %c239_i32 dim 1 : vector<4x256xf32>, i32 -> vector<4x256xf32>
    %37 = vector.extract_strided_slice %0 {offsets = [8, 0], sizes = [1, 256], strides = [1, 1]} : vector<9x256xf32> to vector<1x256xf32>
    %38 = vector.broadcast %37 : vector<1x256xf32> to vector<4x256xf32>
    %39 = arith.mulf %36, %38 : vector<4x256xf32>
    %40 = tpu.concatenate %8, %12, %16, %20, %23, %27, %31, %35, %39 in 0 : vector<4x256xf32>, vector<4x256xf32>, vector<4x256xf32>, vector<4x256xf32>, vector<4x256xf32>, vector<4x256xf32>, vector<4x256xf32>, vector<4x256xf32>, vector<4x256xf32> -> vector<36x256xf32>
    %c0_4 = arith.constant 0 : index
    %c0_5 = arith.constant 0 : index
    %41 = vector.load %arg3[%c0_4, %c0_5] : memref<8x36xf32, #tpu.memory_space<vmem>>, vector<8x36xf32>
    %cst_6 = arith.constant dense<0.000000e+00> : vector<8x256xf32>
    %42 = tpu.matmul %41, %40, %cst_6 {dimension_numbers = #tpu.dot_dimension_numbers<[1], [0], [0], [1], [0, 0, 1, 1], [], []>} : vector<8x36xf32>, vector<36x256xf32>, vector<8x256xf32> -> vector<8x256xf32>
    %c0_7 = arith.constant 0 : index
    %c0_8 = arith.constant 0 : index
    %43 = vector.load %arg4[%c0_7, %c0_8] : memref<8x1xf32, #tpu.memory_space<vmem>>, vector<8x1xf32>
    %44 = vector.broadcast %43 : vector<8x1xf32> to vector<8x256xf32>
    %45 = arith.addf %42, %44 : vector<8x256xf32>
    %46 = tpu.concatenate %2, %45 in 0 : vector<4x256xf32>, vector<8x256xf32> -> vector<12x256xf32>
    %cst_9 = arith.constant 0.000000e+00 : f32
    %47 = vector.broadcast %cst_9 : f32 to vector<12x256xf32>
    %48 = arith.maximumf %46, %47 : vector<12x256xf32>
    %c17_i32_10 = arith.constant 17 : i32
    %49 = tpu.dynamic_rotate %48 by %c17_i32_10 dim 1 : vector<12x256xf32>, i32 -> vector<12x256xf32>
    %50 = vector.extract_strided_slice %0 {offsets = [0, 0], sizes = [1, 256], strides = [1, 1]} : vector<9x256xf32> to vector<1x256xf32>
    %51 = vector.broadcast %50 : vector<1x256xf32> to vector<12x256xf32>
    %52 = arith.mulf %49, %51 : vector<12x256xf32>
    %c16_i32_11 = arith.constant 16 : i32
    %53 = tpu.dynamic_rotate %48 by %c16_i32_11 dim 1 : vector<12x256xf32>, i32 -> vector<12x256xf32>
    %54 = vector.extract_strided_slice %0 {offsets = [1, 0], sizes = [1, 256], strides = [1, 1]} : vector<9x256xf32> to vector<1x256xf32>
    %55 = vector.broadcast %54 : vector<1x256xf32> to vector<12x256xf32>
    %56 = arith.mulf %53, %55 : vector<12x256xf32>
    %c15_i32_12 = arith.constant 15 : i32
    %57 = tpu.dynamic_rotate %48 by %c15_i32_12 dim 1 : vector<12x256xf32>, i32 -> vector<12x256xf32>
    %58 = vector.extract_strided_slice %0 {offsets = [2, 0], sizes = [1, 256], strides = [1, 1]} : vector<9x256xf32> to vector<1x256xf32>
    %59 = vector.broadcast %58 : vector<1x256xf32> to vector<12x256xf32>
    %60 = arith.mulf %57, %59 : vector<12x256xf32>
    %c1_i32_13 = arith.constant 1 : i32
    %61 = tpu.dynamic_rotate %48 by %c1_i32_13 dim 1 : vector<12x256xf32>, i32 -> vector<12x256xf32>
    %62 = vector.extract_strided_slice %0 {offsets = [3, 0], sizes = [1, 256], strides = [1, 1]} : vector<9x256xf32> to vector<1x256xf32>
    %63 = vector.broadcast %62 : vector<1x256xf32> to vector<12x256xf32>
    %64 = arith.mulf %61, %63 : vector<12x256xf32>
    %65 = vector.extract_strided_slice %0 {offsets = [4, 0], sizes = [1, 256], strides = [1, 1]} : vector<9x256xf32> to vector<1x256xf32>
    %66 = vector.broadcast %65 : vector<1x256xf32> to vector<12x256xf32>
    %67 = arith.mulf %48, %66 : vector<12x256xf32>
    %c255_i32_14 = arith.constant 255 : i32
    %68 = tpu.dynamic_rotate %48 by %c255_i32_14 dim 1 : vector<12x256xf32>, i32 -> vector<12x256xf32>
    %69 = vector.extract_strided_slice %0 {offsets = [5, 0], sizes = [1, 256], strides = [1, 1]} : vector<9x256xf32> to vector<1x256xf32>
    %70 = vector.broadcast %69 : vector<1x256xf32> to vector<12x256xf32>
    %71 = arith.mulf %68, %70 : vector<12x256xf32>
    %c241_i32_15 = arith.constant 241 : i32
    %72 = tpu.dynamic_rotate %48 by %c241_i32_15 dim 1 : vector<12x256xf32>, i32 -> vector<12x256xf32>
    %73 = vector.extract_strided_slice %0 {offsets = [6, 0], sizes = [1, 256], strides = [1, 1]} : vector<9x256xf32> to vector<1x256xf32>
    %74 = vector.broadcast %73 : vector<1x256xf32> to vector<12x256xf32>
    %75 = arith.mulf %72, %74 : vector<12x256xf32>
    %c240_i32_16 = arith.constant 240 : i32
    %76 = tpu.dynamic_rotate %48 by %c240_i32_16 dim 1 : vector<12x256xf32>, i32 -> vector<12x256xf32>
    %77 = vector.extract_strided_slice %0 {offsets = [7, 0], sizes = [1, 256], strides = [1, 1]} : vector<9x256xf32> to vector<1x256xf32>
    %78 = vector.broadcast %77 : vector<1x256xf32> to vector<12x256xf32>
    %79 = arith.mulf %76, %78 : vector<12x256xf32>
    %c239_i32_17 = arith.constant 239 : i32
    %80 = tpu.dynamic_rotate %48 by %c239_i32_17 dim 1 : vector<12x256xf32>, i32 -> vector<12x256xf32>
    %81 = vector.extract_strided_slice %0 {offsets = [8, 0], sizes = [1, 256], strides = [1, 1]} : vector<9x256xf32> to vector<1x256xf32>
    %82 = vector.broadcast %81 : vector<1x256xf32> to vector<12x256xf32>
    %83 = arith.mulf %80, %82 : vector<12x256xf32>
    %84 = tpu.concatenate %52, %56, %60, %64, %67, %71, %75, %79, %83 in 0 : vector<12x256xf32>, vector<12x256xf32>, vector<12x256xf32>, vector<12x256xf32>, vector<12x256xf32>, vector<12x256xf32>, vector<12x256xf32>, vector<12x256xf32>, vector<12x256xf32> -> vector<108x256xf32>
    %c0_18 = arith.constant 0 : index
    %c0_19 = arith.constant 0 : index
    %85 = vector.load %arg5[%c0_18, %c0_19] : memref<12x108xf32, #tpu.memory_space<vmem>>, vector<12x108xf32>
    %cst_20 = arith.constant dense<0.000000e+00> : vector<12x256xf32>
    %86 = tpu.matmul %85, %84, %cst_20 {dimension_numbers = #tpu.dot_dimension_numbers<[1], [0], [0], [1], [0, 0, 1, 1], [], []>} : vector<12x108xf32>, vector<108x256xf32>, vector<12x256xf32> -> vector<12x256xf32>
    %c0_21 = arith.constant 0 : index
    %c0_22 = arith.constant 0 : index
    %87 = vector.load %arg6[%c0_21, %c0_22] : memref<12x1xf32, #tpu.memory_space<vmem>>, vector<12x1xf32>
    %88 = vector.broadcast %87 : vector<12x1xf32> to vector<12x256xf32>
    %89 = arith.addf %86, %88 : vector<12x256xf32>
    %90 = tpu.concatenate %2, %45, %89 in 0 : vector<4x256xf32>, vector<8x256xf32>, vector<12x256xf32> -> vector<24x256xf32>
    %c0_23 = arith.constant 0 : index
    %c0_24 = arith.constant 0 : index
    %91 = vector.load %arg7[%c0_23, %c0_24] : memref<24x1xf32, #tpu.memory_space<vmem>>, vector<24x1xf32>
    %92 = vector.broadcast %91 : vector<24x1xf32> to vector<24x256xf32>
    %93 = arith.mulf %90, %92 : vector<24x256xf32>
    %c0_25 = arith.constant 0 : index
    %c0_26 = arith.constant 0 : index
    %94 = vector.load %arg8[%c0_25, %c0_26] : memref<24x1xf32, #tpu.memory_space<vmem>>, vector<24x1xf32>
    %95 = vector.broadcast %94 : vector<24x1xf32> to vector<24x256xf32>
    %96 = arith.addf %93, %95 : vector<24x256xf32>
    %cst_27 = arith.constant 0.000000e+00 : f32
    %97 = vector.broadcast %cst_27 : f32 to vector<24x256xf32>
    %98 = arith.maximumf %96, %97 : vector<24x256xf32>
    %c0_28 = arith.constant 0 : index
    %c0_29 = arith.constant 0 : index
    %99 = vector.load %arg9[%c0_28, %c0_29] : memref<8x24xf32, #tpu.memory_space<vmem>>, vector<8x24xf32>
    %cst_30 = arith.constant dense<0.000000e+00> : vector<8x256xf32>
    %100 = tpu.matmul %99, %98, %cst_30 {dimension_numbers = #tpu.dot_dimension_numbers<[1], [0], [0], [1], [0, 0, 1, 1], [], []>} : vector<8x24xf32>, vector<24x256xf32>, vector<8x256xf32> -> vector<8x256xf32>
    %c0_31 = arith.constant 0 : index
    %c0_32 = arith.constant 0 : index
    %101 = vector.load %arg10[%c0_31, %c0_32] : memref<8x1xf32, #tpu.memory_space<vmem>>, vector<8x1xf32>
    %102 = vector.broadcast %101 : vector<8x1xf32> to vector<8x256xf32>
    %103 = arith.addf %100, %102 : vector<8x256xf32>
    %c0_33 = arith.constant 0 : index
    %c0_34 = arith.constant 0 : index
    %c0_35 = arith.constant 0 : index
    %104 = vector.load %arg11[%c0_33, %c0_34, %c0_35] : memref<1x8x256xf32, #tpu.memory_space<vmem>>, vector<1x8x256xf32>
    %105 = vector.shape_cast %104 : vector<1x8x256xf32> to vector<8x256xf32>
    %106 = vector.shape_cast %103 : vector<8x256xf32> to vector<1x8x256xf32>
    tpu.vector_store %arg11[%c0_33, %c0_34, %c0_35], %106 {strides = array<i32>} : memref<1x8x256xf32, #tpu.memory_space<vmem>>, vector<1x8x256xf32>,
    return
  }
  func.func @transform_0(%arg0: i32) -> (i32, i32, i32) {
    %c0_i32 = arith.constant 0 : i32
    %c0_i32_0 = arith.constant 0 : i32
    %c0_i32_1 = arith.constant 0 : i32
    return %arg0, %c0_i32, %c0_i32_0 : i32, i32, i32
  }
  func.func @transform_1(%arg0: i32) -> (i32, i32) {
    %c0_i32 = arith.constant 0 : i32
    %c0_i32_0 = arith.constant 0 : i32
    %c0_i32_1 = arith.constant 0 : i32
    return %c0_i32, %c0_i32_0 : i32, i32
  }
  func.func @transform_2(%arg0: i32) -> (i32, i32) {
    %c0_i32 = arith.constant 0 : i32
    %c0_i32_0 = arith.constant 0 : i32
    %c0_i32_1 = arith.constant 0 : i32
    return %c0_i32, %c0_i32_0 : i32, i32
  }
  func.func @transform_3(%arg0: i32) -> (i32, i32) {
    %c0_i32 = arith.constant 0 : i32
    %c0_i32_0 = arith.constant 0 : i32
    %c0_i32_1 = arith.constant 0 : i32
    return %c0_i32, %c0_i32_0 : i32, i32
  }
  func.func @transform_4(%arg0: i32) -> (i32, i32) {
    %c0_i32 = arith.constant 0 : i32
    %c0_i32_0 = arith.constant 0 : i32
    %c0_i32_1 = arith.constant 0 : i32
    return %c0_i32, %c0_i32_0 : i32, i32
  }
  func.func @transform_5(%arg0: i32) -> (i32, i32) {
    %c0_i32 = arith.constant 0 : i32
    %c0_i32_0 = arith.constant 0 : i32
    %c0_i32_1 = arith.constant 0 : i32
    return %c0_i32, %c0_i32_0 : i32, i32
  }
  func.func @transform_6(%arg0: i32) -> (i32, i32) {
    %c0_i32 = arith.constant 0 : i32
    %c0_i32_0 = arith.constant 0 : i32
    %c0_i32_1 = arith.constant 0 : i32
    return %c0_i32, %c0_i32_0 : i32, i32
  }
  func.func @transform_7(%arg0: i32) -> (i32, i32) {
    %c0_i32 = arith.constant 0 : i32
    %c0_i32_0 = arith.constant 0 : i32
    %c0_i32_1 = arith.constant 0 : i32
    return %c0_i32, %c0_i32_0 : i32, i32
  }
  func.func @transform_8(%arg0: i32) -> (i32, i32) {
    %c0_i32 = arith.constant 0 : i32
    %c0_i32_0 = arith.constant 0 : i32
    %c0_i32_1 = arith.constant 0 : i32
    return %c0_i32, %c0_i32_0 : i32, i32
  }
  func.func @transform_9(%arg0: i32) -> (i32, i32) {
    %c0_i32 = arith.constant 0 : i32
    %c0_i32_0 = arith.constant 0 : i32
    %c0_i32_1 = arith.constant 0 : i32
    return %c0_i32, %c0_i32_0 : i32, i32
  }
  func.func @transform_10(%arg0: i32) -> (i32, i32, i32) {
    %c0_i32 = arith.constant 0 : i32
    %c0_i32_0 = arith.constant 0 : i32
    %c0_i32_1 = arith.constant 0 : i32
    return %arg0, %c0_i32, %c0_i32_0 : i32, i32, i32
  }
}

</mosaic_0001>

<bundles_post_ra>
// kernel: dense_block_pallas.1
= control target key start
LH: loop header
LB: loop body
LE: loop exit
PB: predicated region body
PF: predicated region fallthrough
CT: control target
= control target key end

     0   :  { %s1285_s13 = smov 0   ;;  %s1773_s0 = inlined_call_operand.vmem [shape: f32[2,4,256], index: 0, kind: input, shape index: {}]   ;;  %s1774_s1 = inlined_call_operand.vmem [shape: f32[9,256], index: 1, kind: input, shape index: {}]   ;;  %s1775_s2 = inlined_call_operand.vmem [shape: f32[8,36], index: 2, kind: input, shape index: {}]   ;;  %s1776_s3 = inlined_call_operand.vmem [shape: f32[8,1], index: 3, kind: input, shape index: {}]   ;;  %s1777_s4 = inlined_call_operand.vmem [shape: f32[12,108], index: 4, kind: input, shape index: {}]   ;;  %s1778_s5 = inlined_call_operand.vmem [shape: f32[12,1], index: 5, kind: input, shape index: {}]   ;;  %s1779_s6 = inlined_call_operand.vmem [shape: f32[24,1], index: 6, kind: input, shape index: {}]   ;;  %s1780_s7 = inlined_call_operand.vmem [shape: f32[24,1], index: 7, kind: input, shape index: {}]   ;;  %s1781_s8 = inlined_call_operand.vmem [shape: f32[8,24], index: 8, kind: input, shape index: {}]   ;;  %s1782_s9 = inlined_call_operand.vmem [shape: f32[8,1], index: 9, kind: input, shape index: {}]   ;;  %s1783_s10 = inlined_call_operand.vmem [shape: f32[2,8,256], index: 10, kind: output, shape index: {}]  }
   0x1 LB: > { %s1168_s14 = sadd.s32 4294967295, %s1218_s13   ;;  %p1172_p0 = scmp.ge.s32.totalorder %s1218_s13, 1  ;;  %s1218_s13 = sphi %s1285_s13, %s20_s13  }
   0x2   : > { %p312_p1 = scmp.lt.s32.totalorder %s1218_s13, 3 }
   0x4   : > { %p313_p2 = pnand %p1172_p0, %p312_p1 }
   0x5   : > { %p350_p3 = scmp.lt.s32.totalorder (!%p313_p2), %s1168_s14, 1  ;;  %s1220_s19 = smov (!%p313_p2), 111  }
   0x6   : > { %316 = sbr.rel (%p313_p2) target bundleno = 963 (0x3c3), region = 60  ;;  %s1221_s20 = smov (!%p313_p2), 112  }
   0x7   : > { %s1222_s21 = smov (!%p313_p2), 127   ;;  %s1223_s22 = smov (!%p313_p2), 113  }
   0x8   : > { %s1224_s23 = smov (!%p313_p2), 1   ;;  %s1225_s24 = smov (!%p313_p2), 16  }
   0x9   : > { %s1228_s25 = smov (!%p313_p2), 15   ;;  %s1229_s26 = smov (!%p313_p2), 17  }
   0xb   : > { %s1785_s14 = smov (!%p350_p3, %s1168_s14), 1  ;;  %v1226_v3 = vmov 0.0   ;;  %v1227_v4 = vmov 0   ;;  %v557_v5 = vld [vmem:[%s1776_s3] sm:$0xff]  ;;  %v373_v6 = vlaneseq  ;;  %v1346_v10 = vld [vmem:[%s1774_s1 + $0x8] sm:$0xff]  ;;  %vm547_vm1 = vcmask 1043456  }
   0xc   : > { %s1189_s15 = sshll.u32 %s1785_s14, 3  ;;  %637 = vmatprep.mubr.f32.mxu0 %v1226_v3  ;;  %946 = vmatprep.mubr.f32.mxu1 %v1226_v3  ;;  %v1341_v9 = vld [vmem:[%s1774_s1] sm:$0xff]  ;;  %v1362_v18 = vld [vmem:[%s1774_s1 + $0x10] ss:$0 sm:$0xff]  ;;  %v1367_v19 = vld [vmem:[%s1774_s1 + $0x18] ss:$0 sm:$0xff] }
   0xd   : > { %s354_s18 = scalar_lea.vmem %s1773_s0, %s1189_s15  ;;  %1209 = vset.pattern.permute.xlu0 %v1227_v4  ;;  %1210 = vset.pattern.permute.xlu1 %v1227_v4  ;;  %v1335_v7 = vshrl.u32 %v373_v6, 7  ;;  %v1348_v11 = vand.u32 127, %v373_v6  ;;  %vm563_vm9 = vcmask 293888   ;;  %vm869_vm10 = vcmask 883712  }
   0xe   : > { %v1299_v0 = vld [vmem:[%s354_s18] sm:$0xff]  ;;  %vm1036_vm11 = vcmask 195584  }
   0xf   : > { %v1302_v1 = vmax.f32 %v1299_v0, 0.0  ;;  %v441_v8 = vsub.s32 4, %v1335_v7  ;;  %v461_v16 = vsub.s32 5, %v1335_v7  ;;  %vm507_vm0 = vcmp.lt.s32.totalorder %v1348_v11, 111 }
  0x10   : > { %v495_v17 = vsub.s32 7, %v1335_v7  ;;  %vm456_vm2 = vcmp.lt.s32.totalorder %v1348_v11, 127  ;;  %v478_v22 = vsub.s32 6, %v1335_v7  ;;  %vm490_vm3 = vcmp.lt.s32.totalorder %v1348_v11, 112 }
  0x11   : > { %503 = vrot.lane.b32.xlu1 %v1302_v1, %s1220_s19  ;;  %486 = vrot.lane.b32.xlu0 %v1302_v1, %s1221_s20  ;;  %v367_v2 = vcombine.high %v1302_v1, %v1302_v1  ;;  %v1351_v14 = vrot.slane %v1341_v9, %v441_v8  ;;  %v1354_v15 = vrot.slane %v1346_v10, %v441_v8  ;;  %vm473_vm4 = vcmp.lt.s32.totalorder %v1348_v11, 113 }
  0x12   : > { %v1378_v26 = vrot.slane %v1346_v10, %v461_v16  ;;  %v1384_v29 = vrot.slane %v1341_v9, %v495_v17  ;;  %v1387_v30 = vrot.slane %v1346_v10, %v495_v17  ;;  %v1390_v31 = vrot.slane %v1341_v9, %v461_v16 }
  0x13   : > { %v449_v23 = vcombine.low %v1351_v14, %v1354_v15  ;;  %v1395_v34 = vrot.slane %v1341_v9, %v478_v22  ;;  %v1411_v43 = vrot.slane %v1346_v10, %v478_v22  ;;  %v431_v47 = vsub.s32 3, %v1335_v7 }
  0x14   : > { %vm426_vm5 = vcmp.lt.s32.totalorder %v1348_v11, 1  ;;  %v397_v63 = vsub.s32 1, %v1335_v7  ;;  %vm392_vm6 = vcmp.lt.s32.totalorder %v1348_v11, 16  ;;  %vm409_vm7 = vcmp.lt.s32.totalorder %v1348_v11, 15 }
  0x15   : > { %452 = vrot.lane.b32.xlu0 %v1302_v1, %s1222_s21  ;;  %505 = vrot.lane.b32.xlu1 %v367_v2, %s1220_s19  ;;  %v451_v35 = vmul.f32 %v449_v23, %v1302_v1  ;;  %v1425_v61 = vrot.slane %v1341_v9, %v431_v47  ;;  %v1428_v62 = vrot.slane %v1346_v10, %v431_v47  ;;  %vm375_vm8 = vcmp.lt.s32.totalorder %v1348_v11, 17  ;;  %v856_v11 = vld [vmem:[%s1777_s4 + $0x8] sm:$0xf] }
  0x17   : > { %v533_v51 = vcombine.high %v451_v35, %v451_v35 }
  0x19   : > { %454 = vrot.lane.b32.xlu1 %v367_v2, %s1222_s21  ;;  %488 = vrot.lane.b32.xlu0 %v367_v2, %s1221_s20 }
  0x1d   : > { %471 = vrot.lane.b32.xlu1 %v367_v2, %s1223_s22  ;;  %469 = vrot.lane.b32.xlu0 %v1302_v1, %s1223_s22 }
  0x21   : > { %424 = vrot.lane.b32.xlu1 %v367_v2, %s1224_s23  ;;  %422 = vrot.lane.b32.xlu0 %v1302_v1, %s1224_s23 }
  0x25   : > { %390 = vrot.lane.b32.xlu1 %v367_v2, %s1225_s24  ;;  %388 = vrot.lane.b32.xlu0 %v1302_v1, %s1225_s24 }
  0x29   : > { %407 = vrot.lane.b32.xlu1 %v367_v2, %s1228_s25  ;;  %405 = vrot.lane.b32.xlu0 %v1302_v1, %s1228_s25 }
  0x2d   : > { %371 = vrot.lane.b32.xlu1 %v367_v2, %s1229_s26  ;;  %369 = vrot.lane.b32.xlu0 %v1302_v1, %s1229_s26 }
  0x31   : > { %560 = vperm.xlu0 %1209, %v557_v5   ;;  %v414_v5 = vsub.s32 2, %v1335_v7 }
  0x33   : > { %v1450_v22 = vrot.slane %v1341_v9, %v414_v5  ;;  %v1453_v23 = vrot.slane %v1346_v10, %v414_v5  ;;  %v645_v5 = vcombine.high %v1299_v0, %v1299_v0 }
  0x83   : > { %v504_v12 = vpop.permute.xlu1 %503  ;;  %v487_v13 = vpop.permute.xlu0 %486 }
  0x87   : > { %v453_v20 = vpop.permute.xlu0 %452  ;;  %v506_v21 = vpop.permute.xlu1 %505 }
  0x88   : > { %v508_v24 = vsel %vm507_vm0, %v504_v12, %v506_v21  ;;  %v509_v25 = vsel %vm507_vm0, %v506_v21, %v504_v12  ;;  %v1446_v21 = vrot.slane %v1346_v10, %v397_v63 }
  0x89   : > { %v518_v27 = vmul.f32 %v1362_v18, %v508_v24  ;;  %v519_v28 = vmul.f32 %v1367_v19, %v509_v25 }
  0x8b   : > { %1179 = vmatprep.subr.msk.mxu0 %vm547_vm1, %v519_v28  ;;  %v455_v32 = vpop.permute.xlu1 %454  ;;  %v489_v33 = vpop.permute.xlu0 %488 }
  0x8c   : > { %v457_v36 = vsel %vm456_vm2, %v453_v20, %v455_v32  ;;  %v458_v37 = vsel %vm456_vm2, %v455_v32, %v453_v20  ;;  %v491_v38 = vsel %vm490_vm3, %v487_v13, %v489_v33  ;;  %v492_v39 = vsel %vm490_vm3, %v489_v33, %v487_v13  ;;  %1180 = vmatpush1.msk.msra.mxu0 %vm547_vm1, %v518_v27 }
  0x8d   : > { %v468_v40 = vmul.f32 %v1378_v26, %v458_v37  ;;  %v501_v41 = vmul.f32 %v1384_v29, %v491_v38  ;;  %v502_v42 = vmul.f32 %v1387_v30, %v492_v39  ;;  %v467_v44 = vmul.f32 %v1390_v31, %v457_v36 }
  0x8e   : > { %v380_v13 = vsub.s32 0, %v1335_v7  ;;  %v1443_v20 = vrot.slane %v1341_v9, %v397_v63 }
  0x8f   : > { %v472_v45 = vpop.permute.xlu1 %471  ;;  %v470_v46 = vpop.permute.xlu0 %469  ;;  %v538_v48 = vrot.slane %v468_v40, 4  ;;  %v543_v52 = vrot.slane %v501_v41, 4  ;;  %v544_v53 = vrot.slane %v502_v42, 4  ;;  %v537_v56 = vrot.slane %v467_v44, 4 }
  0x90   : > { %v474_v49 = vsel %vm473_vm4, %v470_v46, %v472_v45  ;;  %v475_v50 = vsel %vm473_vm4, %v472_v45, %v470_v46  ;;  %v1461_v28 = vrot.slane %v1341_v9, %v380_v13  ;;  %v1464_v32 = vrot.slane %v1346_v10, %v380_v13  ;;  %v858_v13 = vld [vmem:[%s1778_s5 + $0x8] sm:$0xf] }
  0x91   : > { %v484_v54 = vmul.f32 %v1395_v34, %v474_v49  ;;  %v485_v55 = vmul.f32 %v1411_v43, %v475_v50  ;;  %v553_v4 = vsel %vm547_vm1, %v533_v51, %v538_v48  ;;  %v552_v6 = vsel %vm547_vm1, %v451_v35, %v537_v56 }
  0x93   : > { %v425_v57 = vpop.permute.xlu1 %424  ;;  %v423_v58 = vpop.permute.xlu0 %422  ;;  %v555_v59 = vsel %vm547_vm1, %v485_v55, %v544_v53  ;;  %v554_v60 = vsel %vm547_vm1, %v484_v54, %v543_v52  ;;  %v556_v53 = vld [vmem:[%s1775_s2] sm:$0xff] }
  0x94   : > { %597 = vmatprep.subr.mxu0 %v555_v59  ;;  %v427_v1 = vsel %vm426_vm5, %v423_v58, %v425_v57  ;;  %v428_v2 = vsel %vm426_vm5, %v425_v57, %v423_v58 }
  0x95   : > { %598 = vmatpush1.msra.mxu0 %v554_v60  ;;  %v437_v16 = vmul.f32 %v1425_v61, %v428_v2  ;;  %v438_v17 = vmul.f32 %v1428_v62, %v427_v1 }
  0x96   : > { %599 = vmatprep.subr.mxu0 %v553_v4 }
  0x97   : > { %v391_v8 = vpop.permute.xlu1 %390  ;;  %600 = vmatpush1.msra.mxu0 %v552_v6  ;;  %v389_v12 = vpop.permute.xlu0 %388  ;;  %v528_v33 = vrot.slane %v437_v16, 4  ;;  %v529_v35 = vrot.slane %v438_v17, 4  ;;  %v1001_v16 = vld [vmem:[%s1780_s7 + $0x10] sm:$0xff]  ;;  %v976_v17 = vld [vmem:[%s1779_s6 + $0x8] sm:$0xff] }
  0x98   : > { %v393_v7 = vsel %vm392_vm6, %v389_v12, %v391_v8  ;;  %v394_v24 = vsel %vm392_vm6, %v391_v8, %v389_v12  ;;  %v977_v12 = vld [vmem:[%s1779_s6 + $0x10] sm:$0xff] }
  0x99   : > { %v403_v38 = vmul.f32 %v1443_v20, %v394_v24  ;;  %v404_v39 = vmul.f32 %v1446_v21, %v393_v7  ;;  %v1000_v7 = vld [vmem:[%s1780_s7 + $0x8] sm:$0xff]  ;;  %v975_v24 = vld [vmem:[%s1779_s6] sm:$0xff] }
  0x9b   : > { %v408_v25 = vpop.permute.xlu1 %407  ;;  %v406_v27 = vpop.permute.xlu0 %405  ;;  %v522_v47 = vrot.slane %v403_v38, 4  ;;  %v523_v48 = vrot.slane %v404_v39, 4 }
  0x9c   : > { %v410_v36 = vsel %vm409_vm7, %v406_v27, %v408_v25  ;;  %v411_v37 = vsel %vm409_vm7, %v408_v25, %v406_v27  ;;  %v1030_v25 = vld [vmem:[%s1782_s9] sm:$0xff] }
  0x9d   : > { %v420_v40 = vmul.f32 %v1450_v22, %v411_v37  ;;  %v421_v9 = vmul.f32 %v1453_v23, %v410_v36  ;;  %v999_v27 = vld [vmem:[%s1780_s7] sm:$0xff] }
  0x9f   : > { %v372_v41 = vpop.permute.xlu1 %371  ;;  %v370_v42 = vpop.permute.xlu0 %369  ;;  %v551_v10 = vsel %vm547_vm1, %v421_v9, %v529_v35  ;;  %v550_v44 = vsel %vm547_vm1, %v420_v40, %v528_v33 }
  0xa0   : > { %v376_v45 = vsel %vm375_vm8, %v370_v42, %v372_v41  ;;  %v377_v46 = vsel %vm375_vm8, %v372_v41, %v370_v42  ;;  %601 = vmatprep.subr.mxu0 %v551_v10 }
  0xa1   : > { %v386_v49 = vmul.f32 %v1461_v28, %v377_v46  ;;  %v387_v50 = vmul.f32 %v1464_v32, %v376_v45  ;;  %602 = vmatpush1.msra.mxu0 %v550_v44 }
  0xa3   : > { %v549_v51 = vsel %vm547_vm1, %v387_v50, %v523_v48  ;;  %v548_v52 = vsel %vm547_vm1, %v386_v49, %v522_v47 }
  0xa4   : > { %603 = vmatprep.subr.mxu0 %v549_v51 }
  0xa5   : > { %604 = vmatpush1.msra.mxu0 %v548_v52 }
  0xa6   : > { %1181 = vmatmul.mubr.msk.f32.vlgmr.msra.gmra.mxu0 %vm563_vm9, %v556_v53 }
  0xa7   : > { %1104 = vmatprep.mubr.f32.mxu0 %v1226_v3 }
  0xac   : > { %v561_v54 = vpop.permute.xlu0 %560 }
 0x166   : > { %v639_v55 = vpop.f32.mrf.mxu0 }
 0x167   : > { %v640_v56 = vadd.f32 %v639_v55, %v561_v54 }
 0x168   : > { %v641_v60 = vpop.f32.mrf.mxu0 }
 0x169   : > { %v1488_v57 = vrot.slane %v640_v56, 4  ;;  %v642_v1 = vadd.f32 %v641_v60, %v561_v54 }
 0x16b   : > { %v1491_v58 = vmax.f32 %v1488_v57, 0.0  ;;  %v1500_v59 = vsel %vm547_vm1, %v1299_v0, %v1488_v57  ;;  %v1513_v2 = vrot.slane %v642_v1, 4  ;;  %v857_v0 = vld [vmem:[%s1778_s5] sm:$0xff] }
 0x16c   : > { %v1507_v63 = vmax.f32 %v1500_v59, 0.0 }
 0x16d   : > { %745 = vrot.lane.b32.xlu0 %v1491_v58, %s1223_s22  ;;  %777 = vrot.lane.b32.xlu1 %v1491_v58, %s1220_s19  ;;  %v1520_v4 = vmax.f32 %v1513_v2, 0.0  ;;  %v1534_v6 = vsel %vm547_vm1, %v645_v5, %v1513_v2 }
 0x16e   : > { %v1541_v8 = vmax.f32 %v1534_v6, 0.0 }
 0x171   : > { %693 = vrot.lane.b32.xlu0 %v1491_v58, %s1228_s25  ;;  %761 = vrot.lane.b32.xlu1 %v1491_v58, %s1221_s20 }
 0x175   : > { %729 = vrot.lane.b32.xlu1 %v1491_v58, %s1222_s21  ;;  %759 = vrot.lane.b32.xlu0 %v1507_v63, %s1221_s20 }
 0x179   : > { %709 = vrot.lane.b32.xlu1 %v1491_v58, %s1224_s23  ;;  %775 = vrot.lane.b32.xlu0 %v1507_v63, %s1220_s19 }
 0x17d   : > { %781 = vrot.lane.b32.xlu1 %v1520_v4, %s1220_s19  ;;  %727 = vrot.lane.b32.xlu0 %v1507_v63, %s1222_s21 }
 0x181   : > { %765 = vrot.lane.b32.xlu1 %v1520_v4, %s1221_s20  ;;  %743 = vrot.lane.b32.xlu0 %v1507_v63, %s1223_s22 }
 0x185   : > { %749 = vrot.lane.b32.xlu1 %v1520_v4, %s1223_s22  ;;  %707 = vrot.lane.b32.xlu0 %v1507_v63, %s1224_s23 }
 0x189   : > { %733 = vrot.lane.b32.xlu1 %v1520_v4, %s1222_s21  ;;  %763 = vrot.lane.b32.xlu0 %v1541_v8, %s1221_s20 }
 0x18d   : > { %713 = vrot.lane.b32.xlu1 %v1520_v4, %s1224_s23  ;;  %675 = vrot.lane.b32.xlu0 %v1507_v63, %s1225_s24 }
 0x191   : > { %697 = vrot.lane.b32.xlu1 %v1520_v4, %s1228_s25  ;;  %731 = vrot.lane.b32.xlu0 %v1541_v8, %s1222_s21 }
 0x195   : > { %779 = vrot.lane.b32.xlu1 %v1541_v8, %s1220_s19  ;;  %711 = vrot.lane.b32.xlu0 %v1541_v8, %s1224_s23 }
 0x199   : > { %747 = vrot.lane.b32.xlu1 %v1541_v8, %s1223_s22  ;;  %691 = vrot.lane.b32.xlu0 %v1507_v63, %s1228_s25 }
 0x19d   : > { %677 = vrot.lane.b32.xlu1 %v1491_v58, %s1225_s24  ;;  %679 = vrot.lane.b32.xlu0 %v1541_v8, %s1225_s24 }
 0x1a1   : > { %681 = vrot.lane.b32.xlu1 %v1520_v4, %s1225_s24  ;;  %661 = vrot.lane.b32.xlu0 %v1491_v58, %s1229_s26 }
 0x1a5   : > { %695 = vrot.lane.b32.xlu1 %v1541_v8, %s1228_s25  ;;  %659 = vrot.lane.b32.xlu0 %v1507_v63, %s1229_s26  ;;  %s1190_s25 = sshll.u32 %s1785_s14, 4 }
 0x1a6   : > { %s359_s11 = scalar_lea.vmem %s1783_s10, %s1190_s25 }
 0x1a9   : > { %665 = vrot.lane.b32.xlu1 %v1520_v4, %s1229_s26  ;;  %861 = vperm.xlu0 %1209, %v857_v0  }
 0x1ad   : > { %663 = vrot.lane.b32.xlu1 %v1541_v8, %s1229_s26  ;;  %990 = vperm.xlu0 %1209, %v977_v12  }
 0x1b1   : > { %866 = vperm.xlu1 %1210, %v858_v13   ;;  %1014 = vperm.xlu0 %1209, %v1001_v16  }
 0x1b5   : > { %985 = vperm.xlu1 %1210, %v976_v17   ;;  %1009 = vperm.xlu0 %1209, %v1000_v7  }
 0x1b9   : > { %980 = vperm.xlu1 %1210, %v975_v24   ;;  %1033 = vperm.xlu0 %1209, %v1030_v25  }
 0x1bd   : > { %1004 = vperm.xlu1 %1210, %v999_v27  }
 0x1df   : > { %v746_v33 = vpop.permute.xlu0 %745  ;;  %v778_v35 = vpop.permute.xlu1 %777 }
 0x1e3   : > { %v1606_v36 = vpop.permute.xlu0 %693  ;;  %v762_v37 = vpop.permute.xlu1 %761 }
 0x1e7   : > { %v730_v38 = vpop.permute.xlu1 %729  ;;  %v760_v39 = vpop.permute.xlu0 %759 }
 0x1eb   : > { %v1608_v40 = vpop.permute.xlu1 %709  ;;  %v776_v9 = vpop.permute.xlu0 %775 }
 0x1ef   : > { %v782_v41 = vpop.permute.xlu1 %781  ;;  %v728_v42 = vpop.permute.xlu0 %727 }
 0x1f0   : > { %v784_v10 = vsel %vm507_vm0, %v778_v35, %v782_v41  ;;  %v786_v44 = vsel %vm507_vm0, %v782_v41, %v778_v35 }
 0x1f1   : > { %v789_v45 = vmul.f32 %v1362_v18, %v784_v10  ;;  %v790_v46 = vmul.f32 %v1367_v19, %v786_v44 }
 0x1f3   : > { %1182 = vmatprep.subr.msk.mxu1 %vm547_vm1, %v790_v46  ;;  %v766_v47 = vpop.permute.xlu1 %765  ;;  %v744_v48 = vpop.permute.xlu0 %743 }
 0x1f4   : > { %1183 = vmatpush1.msk.msra.mxu1 %vm547_vm1, %v789_v45  ;;  %v770_v60 = vsel %vm490_vm3, %v766_v47, %v762_v37  ;;  %v768_v0 = vsel %vm490_vm3, %v762_v37, %v766_v47 }
 0x1f5   : > { %v774_v16 = vmul.f32 %v770_v60, %v1387_v30  ;;  %v773_v17 = vmul.f32 %v768_v0, %v1384_v29 }
 0x1f7   : > { %v750_v49 = vpop.permute.xlu1 %749  ;;  %v708_v50 = vpop.permute.xlu0 %707  ;;  %v841_v45 = vrot.slane %v774_v16, 4  ;;  %v839_v47 = vrot.slane %v773_v17, 4 }
 0x1f8   : > { %v752_v7 = vsel %vm473_vm4, %v746_v33, %v750_v49  ;;  %v754_v24 = vsel %vm473_vm4, %v750_v49, %v746_v33 }
 0x1f9   : > { %v757_v49 = vmul.f32 %v752_v7, %v1395_v34 }
 0x1fb   : > { %v734_v51 = vpop.permute.xlu1 %733  ;;  %v764_v52 = vpop.permute.xlu0 %763 }
 0x1fc   : > { %v769_v55 = vsel %vm490_vm3, %v764_v52, %v760_v39  ;;  %v767_v56 = vsel %vm490_vm3, %v760_v39, %v764_v52  ;;  %v738_v41 = vsel %vm456_vm2, %v734_v51, %v730_v38  ;;  %v736_v46 = vsel %vm456_vm2, %v730_v38, %v734_v51 }
 0x1fd   : > { %v772_v12 = vmul.f32 %v769_v55, %v1387_v30  ;;  %v771_v13 = vmul.f32 %v767_v56, %v1384_v29  ;;  %v758_v55 = vmul.f32 %v754_v24, %v1411_v43  ;;  %v742_v56 = vmul.f32 %v738_v41, %v1378_v26 }
 0x1fe   : > { %v741_v51 = vmul.f32 %v736_v46, %v1390_v31 }
 0x1ff   : > { %v714_v53 = vpop.permute.xlu1 %713  ;;  %v1618_v54 = vpop.permute.xlu0 %675  ;;  %v838_v37 = vrot.slane %v772_v12, 4  ;;  %v837_v10 = vrot.slane %v771_v13, 4  ;;  %v827_v24 = vrot.slane %v742_v56, 4 }
 0x201   : > { %v842_v38 = vsel %vm547_vm1, %v838_v37, %v841_v45  ;;  %v840_v0 = vsel %vm547_vm1, %v837_v10, %v839_v47  ;;  %v854_v13 = vsel %vm547_vm1, %v758_v55, %v838_v37 }
 0x203   : > { %v1626_v1 = vpop.permute.xlu1 %697  ;;  %v732_v5 = vpop.permute.xlu0 %731 }
 0x204   : > { %v737_v25 = vsel %vm456_vm2, %v732_v5, %v728_v42  ;;  %v735_v39 = vsel %vm456_vm2, %v728_v42, %v732_v5 }
 0x205   : > { %v740_v42 = vmul.f32 %v737_v25, %v1378_v26  ;;  %v739_v52 = vmul.f32 %v735_v39, %v1390_v31  ;;  %v716_v31 = vsel %vm426_vm5, %v1608_v40, %v714_v53  ;;  %v718_v25 = vsel %vm426_vm5, %v714_v53, %v1608_v40 }
 0x206   : > { %v725_v40 = vmul.f32 %v1491_v58, %v1351_v14  ;;  %v721_v53 = vmul.f32 %v718_v25, %v1425_v61  ;;  %v700_v58 = vsel %vm409_vm7, %v1606_v36, %v1626_v1 }
 0x207   : > { %v780_v27 = vpop.permute.xlu1 %779  ;;  %v712_v35 = vpop.permute.xlu0 %711  ;;  %v824_v26 = vrot.slane %v740_v42, 4  ;;  %v823_v16 = vrot.slane %v739_v52, 4 }
 0x208   : > { %v783_v30 = vsel %vm507_vm0, %v776_v9, %v780_v27  ;;  %v785_v29 = vsel %vm507_vm0, %v780_v27, %v776_v9  ;;  %v715_v60 = vsel %vm426_vm5, %v708_v50, %v712_v35  ;;  %v717_v12 = vsel %vm426_vm5, %v712_v35, %v708_v50 }
 0x209   : > { %v787_v33 = vmul.f32 %v1362_v18, %v783_v30  ;;  %v788_v44 = vmul.f32 %v1367_v19, %v785_v29  ;;  %v720_v50 = vmul.f32 %v715_v60, %v1428_v62  ;;  %v825_v35 = vrot.slane %v741_v51, 4 }
 0x20a   : > { %v719_v37 = vmul.f32 %v717_v12, %v1425_v61  ;;  %v828_v30 = vsel %vm547_vm1, %v824_v26, %v827_v24  ;;  %v726_v29 = vmul.f32 %v1520_v4, %v1354_v15  ;;  %v811_v47 = vrot.slane %v721_v53, 4 }
 0x20b   : > { %v748_v9 = vpop.permute.xlu1 %747  ;;  %888 = vmatprep.subr.mxu1 %v788_v44  ;;  %v1659_v19 = vpop.permute.xlu0 %691  ;;  %v826_v41 = vsel %vm547_vm1, %v823_v16, %v825_v35 }
 0x20c   : > { %v753_v18 = vsel %vm473_vm4, %v748_v9, %v744_v48  ;;  %889 = vmatpush1.msra.mxu1 %v787_v33  ;;  %v751_v5 = vsel %vm473_vm4, %v744_v48, %v748_v9  ;;  %v853_v48 = vsel %vm547_vm1, %v757_v49, %v837_v10  ;;  %v724_v10 = vmul.f32 %v1541_v8, %v1354_v15 }
 0x20d   : > { %890 = vmatprep.subr.mxu1 %v842_v38  ;;  %v756_v17 = vmul.f32 %v753_v18, %v1411_v43  ;;  %v755_v27 = vmul.f32 %v751_v5, %v1395_v34  ;;  %v722_v43 = vmul.f32 %v716_v31, %v1428_v62  ;;  %v723_v62 = vmul.f32 %v1507_v63, %v1351_v14 }
 0x20e   : > { %891 = vmatpush1.msra.mxu1 %v840_v0  ;;  %v810_v33 = vrot.slane %v720_v50, 4  ;;  %v852_v61 = vsel %vm547_vm1, %v726_v29, %v824_v26  ;;  %v809_v45 = vrot.slane %v719_v37, 4  ;;  %v851_v15 = vsel %vm547_vm1, %v725_v40, %v823_v16 }
 0x20f   : > { %v678_v7 = vpop.permute.xlu1 %677  ;;  %892 = vmatprep.subr.mxu1 %v854_v13  ;;  %v680_v39 = vpop.permute.xlu0 %679  ;;  %v813_v63 = vrot.slane %v722_v43, 4  ;;  %v702_v8 = vsel %vm409_vm7, %v1626_v1, %v1606_v36  ;;  %v706_v9 = vmul.f32 %v700_v58, %v1453_v23 }
 0x210   : > { %893 = vmatpush1.msra.mxu1 %v853_v48  ;;  %v683_v14 = vsel %vm392_vm6, %v1618_v54, %v680_v39  ;;  %v685_v46 = vsel %vm392_vm6, %v680_v39, %v1618_v54  ;;  %v705_v54 = vmul.f32 %v702_v8, %v1450_v22  ;;  %v812_v51 = vsel %vm547_vm1, %v809_v45, %v811_v47  ;;  %v855_v39 = vld [vmem:[%s1777_s4] sm:$0xff] }
 0x211   : > { %894 = vmatprep.subr.mxu1 %v756_v17  ;;  %v688_v55 = vmul.f32 %v683_v14, %v1446_v21  ;;  %v814_v1 = vsel %vm547_vm1, %v810_v33, %v813_v63  ;;  %v687_v56 = vmul.f32 %v685_v46, %v1443_v20  ;;  %v850_v60 = vsel %vm547_vm1, %v706_v9, %v810_v33 }
 0x212   : > { %895 = vmatpush1.msra.mxu1 %v755_v27  ;;  %v849_v12 = vsel %vm547_vm1, %v705_v54, %v809_v45 }
 0x213   : > { %v682_v34 = vpop.permute.xlu1 %681  ;;  %896 = vmatprep.subr.mxu1 %v828_v30  ;;  %v662_v18 = vpop.permute.xlu0 %661  ;;  %v795_v16 = vrot.slane %v687_v56, 4 }
 0x214   : > { %v684_v44 = vsel %vm392_vm6, %v678_v7, %v682_v34  ;;  %v686_v4 = vsel %vm392_vm6, %v682_v34, %v678_v7  ;;  %897 = vmatpush1.msra.mxu1 %v826_v41 }
 0x215   : > { %898 = vmatprep.subr.mxu1 %v852_v61  ;;  %v690_v42 = vmul.f32 %v684_v44, %v1446_v21  ;;  %v689_v49 = vmul.f32 %v686_v4, %v1443_v20  ;;  %v796_v20 = vrot.slane %v688_v55, 4 }
 0x216   : > { %899 = vmatpush1.msra.mxu1 %v851_v15 }
 0x217   : > { %v696_v52 = vpop.permute.xlu1 %695  ;;  %900 = vmatprep.subr.mxu1 %v724_v10  ;;  %v799_v21 = vrot.slane %v690_v42, 4  ;;  %v797_v5 = vrot.slane %v689_v49, 4  ;;  %v660_v48 = vpop.permute.xlu0 %659 }
 0x218   : > { %v699_v36 = vsel %vm409_vm7, %v1659_v19, %v696_v52  ;;  %901 = vmatpush1.msra.mxu1 %v723_v62  ;;  %v701_v38 = vsel %vm409_vm7, %v696_v52, %v1659_v19 }
 0x219   : > { %902 = vmatprep.subr.mxu1 %v814_v1  ;;  %v704_v0 = vmul.f32 %v699_v36, %v1453_v23  ;;  %v703_v13 = vmul.f32 %v701_v38, %v1450_v22  ;;  %v800_v23 = vsel %vm547_vm1, %v796_v20, %v799_v21  ;;  %v798_v22 = vsel %vm547_vm1, %v795_v16, %v797_v5 }
 0x21a   : > { %903 = vmatpush1.msra.mxu1 %v812_v51 }
 0x21b   : > { %v666_v26 = vpop.permute.xlu1 %665  ;;  %904 = vmatprep.subr.mxu1 %v850_v60 }
 0x21c   : > { %v668_v19 = vsel %vm375_vm8, %v662_v18, %v666_v26  ;;  %v670_v31 = vsel %vm375_vm8, %v666_v26, %v662_v18  ;;  %905 = vmatpush1.msra.mxu1 %v849_v12 }
 0x21d   : > { %v673_v17 = vmul.f32 %v670_v31, %v1461_v28  ;;  %v674_v7 = vmul.f32 %v668_v19, %v1464_v32  ;;  %906 = vmatprep.subr.mxu1 %v704_v0 }
 0x21e   : > { %907 = vmatpush1.msra.mxu1 %v703_v13 }
 0x21f   : > { %v664_v24 = vpop.permute.xlu1 %663  ;;  %908 = vmatprep.subr.mxu1 %v800_v23  ;;  %v848_v25 = vsel %vm547_vm1, %v674_v7, %v796_v20  ;;  %v847_v43 = vsel %vm547_vm1, %v673_v17, %v795_v16 }
 0x220   : > { %v667_v50 = vsel %vm375_vm8, %v660_v48, %v664_v24  ;;  %v669_v27 = vsel %vm375_vm8, %v664_v24, %v660_v48  ;;  %909 = vmatpush1.msra.mxu1 %v798_v22 }
 0x221   : > { %v671_v35 = vmul.f32 %v669_v27, %v1461_v28  ;;  %v672_v37 = vmul.f32 %v667_v50, %v1464_v32  ;;  %910 = vmatprep.subr.mxu1 %v848_v25 }
 0x222   : > { %911 = vmatpush1.msra.mxu1 %v847_v43 }
 0x223   : > { %912 = vmatprep.subr.mxu1 %v672_v37 }
 0x224   : > { %913 = vmatpush1.msra.mxu1 %v671_v35  ;;  %v862_v28 = vpop.permute.xlu0 %861 }
 0x225   : > { %1184 = vmatmul.mubr.msk.f32.vlgmr.msra.gmra.mxu1 %vm869_vm10, %v855_v39 }
 0x226   : > { %952 = vmatprep.mubr.f32.mxu1 %v1226_v3 }
 0x228   : > { %v991_v29 = vpop.permute.xlu0 %990 }
 0x229   : > { %1185 = vmatmul.mubr.msk.f32.gmra.mxu1 %vm869_vm10, %v856_v11 }
 0x22c   : > { %v867_v32 = vpop.permute.xlu1 %866  ;;  %v1015_v61 = vpop.permute.xlu0 %1014 }
 0x230   : > { %v986_v40 = vpop.permute.xlu1 %985  ;;  %v1010_v9 = vpop.permute.xlu0 %1009 }
 0x234   : > { %v981_v3 = vpop.permute.xlu1 %980 }
 0x235   : > { %v994_v1 = vmul.f32 %v981_v3, %v1534_v6  ;;  %v993_v56 = vmul.f32 %v981_v3, %v1500_v59  ;;  %v1029_v6 = vld [vmem:[%s1781_s8] sm:$0xff]  ;;  %v1034_v59 = vpop.permute.xlu0 %1033 }
 0x238   : > { %v1005_v55 = vpop.permute.xlu1 %1004 }
 0x239   : > { %v1017_v51 = vadd.f32 %v1005_v55, %v993_v56 }
 0x23b   : > { %v1023_v26 = vmax.f32 %v1017_v51, 0.0 }
 0x2e5   : > { %v948_v30 = vpop.f32.mrf.mxu1 }
 0x2e6   : > { %v949_v53 = vadd.f32 %v948_v30, %v862_v28 }
 0x2e7   : > { %v950_v34 = vpop.f32.mrf.mxu1 }
 0x2e8   : > { %v951_v41 = vadd.f32 %v950_v34, %v862_v28  ;;  %v963_v10 = vrot.slane %v949_v53, 4 }
 0x2e9   : > { %v954_v62 = vpop.f32.mrf.mxu1 }
 0x2ea   : > { %v964_v33 = vrot.slane %v951_v41, 4  ;;  %v955_v44 = vadd.f32 %v954_v62, %v867_v32  ;;  %v973_v15 = vsel %vm547_vm1, %v1488_v57, %v963_v10  ;;  %v1018_v57 = vadd.f32 %v1005_v55, %v994_v1 }
 0x2eb   : > { %v956_v4 = vpop.f32.mrf.mxu1  ;;  %v995_v47 = vmul.f32 %v986_v40, %v973_v15 }
 0x2ec   : > { %v974_v58 = vsel %vm547_vm1, %v1513_v2, %v964_v33  ;;  %v965_v45 = vrot.slane %v955_v44, 4  ;;  %v957_v14 = vadd.f32 %v956_v4, %v867_v32  ;;  %v1024_v0 = vmax.f32 %v1018_v57, 0.0 }
 0x2ed   : > { %v996_v42 = vmul.f32 %v986_v40, %v974_v58  ;;  %v1019_v18 = vadd.f32 %v1010_v9, %v995_v47 }
 0x2ee   : > { %v966_v63 = vsel %vm547_vm1, %v963_v10, %v965_v45  ;;  %v967_v8 = vrot.slane %v957_v14, 4 }
 0x2ef   : > { %v997_v46 = vmul.f32 %v991_v29, %v966_v63  ;;  %v1020_v54 = vadd.f32 %v1010_v9, %v996_v42  ;;  %v1025_v5 = vmax.f32 %v1019_v18, 0.0 }
 0x2f0   : > { %v968_v49 = vsel %vm547_vm1, %v964_v33, %v967_v8 }
 0x2f1   : > { %v998_v52 = vmul.f32 %v991_v29, %v968_v49  ;;  %v1021_v36 = vadd.f32 %v1015_v61, %v997_v46  ;;  %v1026_v60 = vmax.f32 %v1020_v54, 0.0 }
 0x2f3   : > { %v1022_v2 = vadd.f32 %v1015_v61, %v998_v52  ;;  %v1027_v21 = vmax.f32 %v1021_v36, 0.0 }
 0x2f5   : > { %v1028_v38 = vmax.f32 %v1022_v2, 0.0 }
 0x2f7   : > { %1066 = vmatprep.subr.mxu0 %v1028_v38 }
 0x2f8   : > { %1067 = vmatpush1.msra.mxu0 %v1027_v21 }
 0x2f9   : > { %1068 = vmatprep.subr.mxu0 %v1026_v60 }
 0x2fa   : > { %1069 = vmatpush1.msra.mxu0 %v1025_v5 }
 0x2fb   : > { %1070 = vmatprep.subr.mxu0 %v1024_v0 }
 0x2fc   : > { %1071 = vmatpush1.msra.mxu0 %v1023_v26 }
 0x2fd   : > { %1186 = vmatmul.mubr.msk.f32.vlgmr.msra.gmra.mxu0 %vm1036_vm11, %v1029_v6 }
 0x3bd   : > { %v1106_v12 = vpop.f32.mrf.mxu0 }
 0x3be   : > { %v1107_v20 = vadd.f32 %v1106_v12, %v1034_v59 }
 0x3bf   : > { %v1108_v13 = vpop.f32.mrf.mxu0 }
 0x3c0   : > { %1111 = vst [vmem:[%s359_s11] sm:$0xff] %v1107_v20  ;;  %v1109_v19 = vadd.f32 %v1108_v13, %v1034_v59 }
 0x3c2   : > { %1112 = vst [vmem:[%s359_s11 + $0x8] sm:$0xff] %v1109_v19 }
 0x3c3 PF: > { %s20_s13 = sadd.s32 1, %s1218_s13  }
 0x3c4   : > { %p17_p4 = scmp.ge.s32.totalorder %s20_s13, 4  }
 0x3c6   :  { %19 = sbr.rel (!%p17_p4) target bundleno = 1 (0x1), region = 90 }

</bundles_post_ra>
